<compile_context>
chip_gen: v6e
topology: v6e:2x2x1
jax: 0.10.0
libtpu: 0.0.40
codegen_flags: <defaults>
</compile_context>

<pallas_src>
import functools

import jax
import jax.numpy as jnp
from jax.experimental import pallas as pl
from jax.experimental.pallas import tpu as pltpu

IGNORE_INDEX = -1
THRESH = 0.7
MIN_KEPT = 256
# Deterministic class weights from the module's __init__ (use_weight=True) -> C = 5.
CLASS_WEIGHT = (1.4543, 43.8739, 34.241, 47.3663, 27.4869)

LANES = 128        # lane width
ROW_TILE = 512     # sublane rows per grid step -> 512*128 = 65536 pixels/step


def _per_pixel_kernel(logit_ref, tgt_ref, out_ref, *, class_weight, ignore_index):
    """Per-pixel max-softmax score + weighted cross-entropy terms.

    logit_ref: (C, tr, 128) logits for tr*128 pixels
    tgt_ref:   (tr, 128)    int32 labels
    out_ref:   (3, tr, 128) f32 packed [score, w[t]*(lse - x[t]), w[t]]
    """
    num_classes = len(class_weight)
    t = tgt_ref[...]
    xs = [logit_ref[ci].astype(jnp.float32) for ci in range(num_classes)]

    # max over channels: C-1 elementwise VPU maxes on dense (tr, 128) tiles.
    m = xs[0]
    for ci in range(1, num_classes):
        m = jnp.maximum(m, xs[ci])

    denom = jnp.zeros_like(m)
    x_t = jnp.zeros_like(m)
    w_t = jnp.zeros_like(m)
    for ci in range(num_classes):
        denom = denom + jnp.exp(xs[ci] - m)
        sel = t == ci
        x_t = jnp.where(sel, xs[ci], x_t)
        w_t = jnp.where(sel, jnp.float32(class_weight[ci]), w_t)

    lse = m + jnp.log(denom)
    score = 1.0 / denom                      # == exp(x_max - lse): max softmax prob
    valid = t != ignore_index
    # Invalid (ignored / padded) pixels get score 2.0 (> any softmax prob) so they
    # are never among the min_kept smallest nor pass `score <= thr` later.
    out_ref[0] = jnp.where(valid, score, 2.0)
    out_ref[1] = jnp.where(valid, w_t * (lse - x_t), 0.0)
    out_ref[2] = jnp.where(valid, w_t, 0.0)


def _ohem_reduce_kernel(thr_ref, packed_ref, nll_sum_ref, wt_sum_ref):
    """Masked weighted reduction over kept pixels (score <= thr).

    thr_ref:    (1,) f32 in SMEM
    packed_ref: (3, tr, 128) f32 [score, nll, wt]
    nll_sum_ref, wt_sum_ref: (1, 1) f32 per-batch accumulators
    """
    @pl.when(pl.program_id(1) == 0)
    def _():
        nll_sum_ref[...] = jnp.zeros_like(nll_sum_ref)
        wt_sum_ref[...] = jnp.zeros_like(wt_sum_ref)

    keep = packed_ref[0] <= thr_ref[0]
    nll_sum_ref[...] += jnp.sum(jnp.where(keep, packed_ref[1], 0.0))[None, None]
    wt_sum_ref[...] += jnp.sum(jnp.where(keep, packed_ref[2], 0.0))[None, None]


def ohem_cross_entropy_loss(pred, target, *, class_weight=CLASS_WEIGHT,
                            ignore_index=IGNORE_INDEX, thresh=THRESH,
                            min_kept=MIN_KEPT, row_tile=ROW_TILE, lanes=LANES):
    n, c, h, w = pred.shape
    assert target.shape == (n, h, w)
    assert len(class_weight) == c
    cw = tuple(float(x) for x in class_weight)

    hw = h * w
    P = n * hw
    L = lanes
    R = pl.cdiv(hw, L)
    tr = R if R <= row_tile else row_tile          # full-dim block when small
    r_pad = pl.cdiv(R, tr) * tr
    hw_pad = r_pad * L

    # Free layout: (N, C, H, W) -> (N, C, HW) -> (N, C, R, 128). Pixel order per
    # batch element matches pred.permute(0,2,3,1).reshape(-1, c) in the reference.
    logits = pred.reshape(n, c, hw)
    tgt = target.reshape(n, hw).astype(jnp.int32)
    if hw_pad != hw:
        logits = jnp.pad(logits, ((0, 0), (0, 0), (0, hw_pad - hw)))
        tgt = jnp.pad(tgt, ((0, 0), (0, hw_pad - hw)), constant_values=ignore_index)
    logits = logits.reshape(n, c, r_pad, L)
    tgt = tgt.reshape(n, r_pad, L)

    n_tiles = r_pad // tr
    grid = (n, n_tiles)
    vmem_params = dict(vmem_limit_bytes=32 * 1024 * 1024)

    # ---- Kernel 1: per-pixel scores + weighted CE terms (packed slab) --------
    packed = pl.pallas_call(
        functools.partial(_per_pixel_kernel, class_weight=cw,
                          ignore_index=ignore_index),
        out_shape=jax.ShapeDtypeStruct((n, 3, r_pad, L), jnp.float32),
        grid=grid,
        in_specs=[
            pl.BlockSpec((pl.Squeezed(), c, tr, L), lambda b, i: (b, 0, i, 0)),
            pl.BlockSpec((pl.Squeezed(), tr, L), lambda b, i: (b, i, 0)),
        ],
        out_specs=pl.BlockSpec((pl.Squeezed(), 3, tr, L), lambda b, i: (b, 0, i, 0)),
        compiler_params=pltpu.CompilerParams(
            dimension_semantics=("parallel", "parallel"), **vmem_params),
    )(logits, tgt)

    # ---- Glue: data-dependent OHEM threshold (reference quirk reproduced) ----
    # top_k over negated scores = indices/values of the min_kept smallest scores.
    scores_flat = packed[:, 0].reshape(n, hw_pad)[:, :hw].reshape(-1)
    k = min(min_kept, P)
    _, idxs = jax.lax.top_k(-scores_flat, k)
    threshold_idx = jnp.maximum(jnp.int32(min_kept), idxs[k - 1])
    threshold = scores_flat[threshold_idx]
    thr = jnp.maximum(threshold, jnp.float32(thresh)).reshape(1)

    # ---- Kernel 2: masked weighted-sum reduction (per-batch partials) --------
    sum_nll, sum_wt = pl.pallas_call(
        _ohem_reduce_kernel,
        out_shape=[jax.ShapeDtypeStruct((n, 1, 1), jnp.float32)] * 2,
        grid=grid,
        in_specs=[
            pl.BlockSpec(memory_space=pltpu.MemorySpace.SMEM),     # thr scalar
            pl.BlockSpec((pl.Squeezed(), 3, tr, L), lambda b, i: (b, 0, i, 0)),
        ],
        out_specs=[pl.BlockSpec((pl.Squeezed(), 1, 1), lambda b, i: (b, 0, 0))] * 2,
        compiler_params=pltpu.CompilerParams(
            dimension_semantics=("parallel", "arbitrary"), **vmem_params),
    )(thr, packed)

    # reduction='mean' with class weights: sum(w[t]*ce) / sum(w[t]) over kept
    # pixels. Degenerate case (nothing kept) yields NaN, same as the reference.
    return jnp.sum(sum_nll) / jnp.sum(sum_wt)


def _reference_loss(pred, target, *, class_weight=CLASS_WEIGHT, thresh=THRESH,
                    min_kept=MIN_KEPT):
    """Pure-JAX re-statement of the PyTorch forward (no ignored pixels)."""
    n, c, h, w = pred.shape
    cw = jnp.asarray(class_weight, jnp.float32)
    logits = jnp.transpose(pred, (0, 2, 3, 1)).reshape(-1, c)
    t = target.reshape(-1)
    scores = jnp.max(jax.nn.softmax(logits, axis=-1), axis=-1)
    idx = jnp.argsort(scores)
    threshold_idx = jnp.maximum(jnp.int32(min_kept), idx[min_kept - 1])
    thr = jnp.maximum(scores[threshold_idx], jnp.float32(thresh))
    keep = scores <= thr
    logp = jax.nn.log_softmax(logits, axis=-1)
    w_t = cw[t]
    nll = -w_t * logp[jnp.arange(t.shape[0]), t]
    return jnp.sum(jnp.where(keep, nll, 0.0)) / jnp.sum(jnp.where(keep, w_t, 0.0))


if __name__ == "__main__":
    key = jax.random.PRNGKey(0)
    k1, k2 = jax.random.split(key)
    N, C, H, W = 2, 5, 16, 16                      # C=5 matches class_weight len
    pred = jax.random.normal(k1, (N, C, H, W), jnp.float32)
    target = jax.random.randint(k2, (N, H, W), 0, C, jnp.int32)

    loss = jax.jit(ohem_cross_entropy_loss)(pred, target)
    loss = jax.block_until_ready(loss)

    ref = jax.block_until_ready(_reference_loss(pred, target))
    assert jnp.allclose(loss, ref, rtol=1e-4, atol=1e-5), (loss, ref)
    print("KERNEL_OK")
</pallas_src>

<mosaic_0001>
module attributes {stable_mosaic.version = 11 : i64} {
  func.func @_per_pixel_kernel(%arg0: i32, %arg1: i32, %arg2: memref<1x5x2x128xf32, #tpu.memory_space<vmem>>, %arg3: memref<1x2x128xi32, #tpu.memory_space<vmem>>, %arg4: memref<1x3x2x128xf32, #tpu.memory_space<vmem>>) attributes {dimension_semantics = [#tpu.dimension_semantics<parallel>, #tpu.dimension_semantics<parallel>], iteration_bounds = array<i64: 2, 1>, scalar_prefetch = 0 : i64, scratch_operands = 0 : i64, tpu.core_type = #tpu.core_type<tc>, window_params = [{transform_indices = @transform_0, window_bounds = array<i64: 1, 5, 2, 128>}, {transform_indices = @transform_1, window_bounds = array<i64: 1, 2, 128>}, {transform_indices = @transform_2, window_bounds = array<i64: 1, 3, 2, 128>}]} {
    %c0 = arith.constant 0 : index
    %c0_0 = arith.constant 0 : index
    %c0_1 = arith.constant 0 : index
    %0 = vector.load %arg3[%c0, %c0_0, %c0_1] : memref<1x2x128xi32, #tpu.memory_space<vmem>>, vector<1x2x128xi32>
    %1 = vector.shape_cast %0 : vector<1x2x128xi32> to vector<2x128xi32>
    %c0_2 = arith.constant 0 : index
    %c0_3 = arith.constant 0 : index
    %c0_4 = arith.constant 0 : index
    %c0_5 = arith.constant 0 : index
    %2 = vector.load %arg2[%c0_2, %c0_3, %c0_4, %c0_5] : memref<1x5x2x128xf32, #tpu.memory_space<vmem>>, vector<1x1x2x128xf32>
    %3 = vector.shape_cast %2 : vector<1x1x2x128xf32> to vector<2x128xf32>
    %c0_6 = arith.constant 0 : index
    %c1 = arith.constant 1 : index
    %c0_7 = arith.constant 0 : index
    %c0_8 = arith.constant 0 : index
    %4 = vector.load %arg2[%c0_6, %c1, %c0_7, %c0_8] : memref<1x5x2x128xf32, #tpu.memory_space<vmem>>, vector<1x1x2x128xf32>
    %5 = vector.shape_cast %4 : vector<1x1x2x128xf32> to vector<2x128xf32>
    %c0_9 = arith.constant 0 : index
    %c2 = arith.constant 2 : index
    %c0_10 = arith.constant 0 : index
    %c0_11 = arith.constant 0 : index
    %6 = vector.load %arg2[%c0_9, %c2, %c0_10, %c0_11] : memref<1x5x2x128xf32, #tpu.memory_space<vmem>>, vector<1x1x2x128xf32>
    %7 = vector.shape_cast %6 : vector<1x1x2x128xf32> to vector<2x128xf32>
    %c0_12 = arith.constant 0 : index
    %c3 = arith.constant 3 : index
    %c0_13 = arith.constant 0 : index
    %c0_14 = arith.constant 0 : index
    %8 = vector.load %arg2[%c0_12, %c3, %c0_13, %c0_14] : memref<1x5x2x128xf32, #tpu.memory_space<vmem>>, vector<1x1x2x128xf32>
    %9 = vector.shape_cast %8 : vector<1x1x2x128xf32> to vector<2x128xf32>
    %c0_15 = arith.constant 0 : index
    %c4 = arith.constant 4 : index
    %c0_16 = arith.constant 0 : index
    %c0_17 = arith.constant 0 : index
    %10 = vector.load %arg2[%c0_15, %c4, %c0_16, %c0_17] : memref<1x5x2x128xf32, #tpu.memory_space<vmem>>, vector<1x1x2x128xf32>
    %11 = vector.shape_cast %10 : vector<1x1x2x128xf32> to vector<2x128xf32>
    %12 = arith.maximumf %3, %5 : vector<2x128xf32>
    %13 = arith.maximumf %12, %7 : vector<2x128xf32>
    %14 = arith.maximumf %13, %9 : vector<2x128xf32>
    %15 = arith.maximumf %14, %11 : vector<2x128xf32>
    %cst = arith.constant 0.000000e+00 : f32
    %16 = vector.broadcast %cst : f32 to vector<2x128xf32>
    %cst_18 = arith.constant 0.000000e+00 : f32
    %17 = vector.broadcast %cst_18 : f32 to vector<2x128xf32>
    %cst_19 = arith.constant 0.000000e+00 : f32
    %18 = vector.broadcast %cst_19 : f32 to vector<2x128xf32>
    %19 = arith.subf %3, %15 : vector<2x128xf32>
    %20 = math.exp %19 : vector<2x128xf32>
    %21 = arith.addf %16, %20 : vector<2x128xf32>
    %c0_i32 = arith.constant 0 : i32
    %22 = vector.broadcast %c0_i32 : i32 to vector<2x128xi32>
    %23 = arith.cmpi eq, %1, %22 : vector<2x128xi32>
    %24 = arith.select %23, %3, %17 : vector<2x128xi1>, vector<2x128xf32>
    %cst_20 = arith.constant 1.454300e+00 : f32
    %25 = vector.broadcast %cst_20 : f32 to vector<2x128xf32>
    %26 = arith.select %23, %25, %18 : vector<2x128xi1>, vector<2x128xf32>
    %27 = arith.subf %5, %15 : vector<2x128xf32>
    %28 = math.exp %27 : vector<2x128xf32>
    %29 = arith.addf %21, %28 : vector<2x128xf32>
    %c1_i32 = arith.constant 1 : i32
    %30 = vector.broadcast %c1_i32 : i32 to vector<2x128xi32>
    %31 = arith.cmpi eq, %1, %30 : vector<2x128xi32>
    %32 = arith.select %31, %5, %24 : vector<2x128xi1>, vector<2x128xf32>
    %cst_21 = arith.constant 4.387390e+01 : f32
    %33 = vector.broadcast %cst_21 : f32 to vector<2x128xf32>
    %34 = arith.select %31, %33, %26 : vector<2x128xi1>, vector<2x128xf32>
    %35 = arith.subf %7, %15 : vector<2x128xf32>
    %36 = math.exp %35 : vector<2x128xf32>
    %37 = arith.addf %29, %36 : vector<2x128xf32>
    %c2_i32 = arith.constant 2 : i32
    %38 = vector.broadcast %c2_i32 : i32 to vector<2x128xi32>
    %39 = arith.cmpi eq, %1, %38 : vector<2x128xi32>
    %40 = arith.select %39, %7, %32 : vector<2x128xi1>, vector<2x128xf32>
    %cst_22 = arith.constant 3.424100e+01 : f32
    %41 = vector.broadcast %cst_22 : f32 to vector<2x128xf32>
    %42 = arith.select %39, %41, %34 : vector<2x128xi1>, vector<2x128xf32>
    %43 = arith.subf %9, %15 : vector<2x128xf32>
    %44 = math.exp %43 : vector<2x128xf32>
    %45 = arith.addf %37, %44 : vector<2x128xf32>
    %c3_i32 = arith.constant 3 : i32
    %46 = vector.broadcast %c3_i32 : i32 to vector<2x128xi32>
    %47 = arith.cmpi eq, %1, %46 : vector<2x128xi32>
    %48 = arith.select %47, %9, %40 : vector<2x128xi1>, vector<2x128xf32>
    %cst_23 = arith.constant 4.736630e+01 : f32
    %49 = vector.broadcast %cst_23 : f32 to vector<2x128xf32>
    %50 = arith.select %47, %49, %42 : vector<2x128xi1>, vector<2x128xf32>
    %51 = arith.subf %11, %15 : vector<2x128xf32>
    %52 = math.exp %51 : vector<2x128xf32>
    %53 = arith.addf %45, %52 : vector<2x128xf32>
    %c4_i32 = arith.constant 4 : i32
    %54 = vector.broadcast %c4_i32 : i32 to vector<2x128xi32>
    %55 = arith.cmpi eq, %1, %54 : vector<2x128xi32>
    %56 = arith.select %55, %11, %48 : vector<2x128xi1>, vector<2x128xf32>
    %cst_24 = arith.constant 2.748690e+01 : f32
    %57 = vector.broadcast %cst_24 : f32 to vector<2x128xf32>
    %58 = arith.select %55, %57, %50 : vector<2x128xi1>, vector<2x128xf32>
    %59 = math.log %53 : vector<2x128xf32>
    %60 = arith.addf %15, %59 : vector<2x128xf32>
    %cst_25 = arith.constant 1.000000e+00 : f32
    %61 = vector.broadcast %cst_25 : f32 to vector<2x128xf32>
    %62 = arith.divf %61, %53 : vector<2x128xf32>
    %c-1_i32 = arith.constant -1 : i32
    %63 = vector.broadcast %c-1_i32 : i32 to vector<2x128xi32>
    %64 = arith.cmpi ne, %1, %63 : vector<2x128xi32>
    %cst_26 = arith.constant 2.000000e+00 : f32
    %65 = vector.broadcast %cst_26 : f32 to vector<2x128xf32>
    %66 = arith.select %64, %62, %65 : vector<2x128xi1>, vector<2x128xf32>
    %c0_27 = arith.constant 0 : index
    %c0_28 = arith.constant 0 : index
    %c0_29 = arith.constant 0 : index
    %c0_30 = arith.constant 0 : index
    %67 = vector.load %arg4[%c0_27, %c0_28, %c0_29, %c0_30] : memref<1x3x2x128xf32, #tpu.memory_space<vmem>>, vector<1x1x2x128xf32>
    %68 = vector.shape_cast %67 : vector<1x1x2x128xf32> to vector<2x128xf32>
    %69 = vector.shape_cast %66 : vector<2x128xf32> to vector<1x1x2x128xf32>
    tpu.vector_store %arg4[%c0_27, %c0_28, %c0_29, %c0_30], %69 {strides = array<i32>} : memref<1x3x2x128xf32, #tpu.memory_space<vmem>>, vector<1x1x2x128xf32>,
    %70 = arith.subf %60, %56 : vector<2x128xf32>
    %71 = arith.mulf %58, %70 : vector<2x128xf32>
    %cst_31 = arith.constant 0.000000e+00 : f32
    %72 = vector.broadcast %cst_31 : f32 to vector<2x128xf32>
    %73 = arith.select %64, %71, %72 : vector<2x128xi1>, vector<2x128xf32>
    %c0_32 = arith.constant 0 : index
    %c1_33 = arith.constant 1 : index
    %c0_34 = arith.constant 0 : index
    %c0_35 = arith.constant 0 : index
    %74 = vector.load %arg4[%c0_32, %c1_33, %c0_34, %c0_35] : memref<1x3x2x128xf32, #tpu.memory_space<vmem>>, vector<1x1x2x128xf32>
    %75 = vector.shape_cast %74 : vector<1x1x2x128xf32> to vector<2x128xf32>
    %76 = vector.shape_cast %73 : vector<2x128xf32> to vector<1x1x2x128xf32>
    tpu.vector_store %arg4[%c0_32, %c1_33, %c0_34, %c0_35], %76 {strides = array<i32>} : memref<1x3x2x128xf32, #tpu.memory_space<vmem>>, vector<1x1x2x128xf32>,
    %cst_36 = arith.constant 0.000000e+00 : f32
    %77 = vector.broadcast %cst_36 : f32 to vector<2x128xf32>
    %78 = arith.select %64, %58, %77 : vector<2x128xi1>, vector<2x128xf32>
    %c0_37 = arith.constant 0 : index
    %c2_38 = arith.constant 2 : index
    %c0_39 = arith.constant 0 : index
    %c0_40 = arith.constant 0 : index
    %79 = vector.load %arg4[%c0_37, %c2_38, %c0_39, %c0_40] : memref<1x3x2x128xf32, #tpu.memory_space<vmem>>, vector<1x1x2x128xf32>
    %80 = vector.shape_cast %79 : vector<1x1x2x128xf32> to vector<2x128xf32>
    %81 = vector.shape_cast %78 : vector<2x128xf32> to vector<1x1x2x128xf32>
    tpu.vector_store %arg4[%c0_37, %c2_38, %c0_39, %c0_40], %81 {strides = array<i32>} : memref<1x3x2x128xf32, #tpu.memory_space<vmem>>, vector<1x1x2x128xf32>,
    return
  }
  func.func @transform_0(%arg0: i32, %arg1: i32) -> (i32, i32, i32, i32) {
    %c0_i32 = arith.constant 0 : i32
    %c0_i32_0 = arith.constant 0 : i32
    %c0_i32_1 = arith.constant 0 : i32
    return %arg0, %c0_i32, %arg1, %c0_i32_0 : i32, i32, i32, i32
  }
  func.func @transform_1(%arg0: i32, %arg1: i32) -> (i32, i32, i32) {
    %c0_i32 = arith.constant 0 : i32
    %c0_i32_0 = arith.constant 0 : i32
    return %arg0, %arg1, %c0_i32 : i32, i32, i32
  }
  func.func @transform_2(%arg0: i32, %arg1: i32) -> (i32, i32, i32, i32) {
    %c0_i32 = arith.constant 0 : i32
    %c0_i32_0 = arith.constant 0 : i32
    %c0_i32_1 = arith.constant 0 : i32
    return %arg0, %c0_i32, %arg1, %c0_i32_0 : i32, i32, i32, i32
  }
}

module attributes {stable_mosaic.version = 11 : i64} {
  func.func @_ohem_reduce_kernel(%arg0: i32, %arg1: i32, %arg2: memref<1xf32, #tpu.memory_space<smem>>, %arg3: memref<1x3x2x128xf32, #tpu.memory_space<vmem>>, %arg4: memref<1x1x1xf32, #tpu.memory_space<vmem>>, %arg5: memref<1x1x1xf32, #tpu.memory_space<vmem>>) attributes {dimension_semantics = [#tpu.dimension_semantics<parallel>, #tpu.dimension_semantics<arbitrary>], iteration_bounds = array<i64: 2, 1>, scalar_prefetch = 0 : i64, scratch_operands = 0 : i64, tpu.core_type = #tpu.core_type<tc>, window_params = [{transform_indices = @transform_0, window_bounds = array<i64: 1>}, {transform_indices = @transform_1, window_bounds = array<i64: 1, 3, 2, 128>}, {transform_indices = @transform_2, window_bounds = array<i64: 1, 1, 1>}, {transform_indices = @transform_3, window_bounds = array<i64: 1, 1, 1>}]} {
    %c0_i32 = arith.constant 0 : i32
    %0 = arith.cmpi eq, %arg1, %c0_i32 : i32
    %1 = arith.extui %0 : i1 to i32
    %c0_i32_0 = arith.constant 0 : i32
    %2 = arith.cmpi ne, %1, %c0_i32_0 : i32
    scf.if %2 {
      %cst_26 = arith.constant 0.000000e+00 : f32
      %38 = vector.broadcast %cst_26 : f32 to vector<1x1xf32>
      %c0_27 = arith.constant 0 : index
      %c0_28 = arith.constant 0 : index
      %c0_29 = arith.constant 0 : index
      %39 = vector.load %arg4[%c0_27, %c0_28, %c0_29] : memref<1x1x1xf32, #tpu.memory_space<vmem>>, vector<1x1x1xf32>
      %40 = vector.shape_cast %39 : vector<1x1x1xf32> to vector<1x1xf32>
      %41 = vector.shape_cast %38 : vector<1x1xf32> to vector<1x1x1xf32>
      tpu.vector_store %arg4[%c0_27, %c0_28, %c0_29], %41 {strides = array<i32>} : memref<1x1x1xf32, #tpu.memory_space<vmem>>, vector<1x1x1xf32>,
      %cst_30 = arith.constant 0.000000e+00 : f32
      %42 = vector.broadcast %cst_30 : f32 to vector<1x1xf32>
      %c0_31 = arith.constant 0 : index
      %c0_32 = arith.constant 0 : index
      %c0_33 = arith.constant 0 : index
      %43 = vector.load %arg5[%c0_31, %c0_32, %c0_33] : memref<1x1x1xf32, #tpu.memory_space<vmem>>, vector<1x1x1xf32>
      %44 = vector.shape_cast %43 : vector<1x1x1xf32> to vector<1x1xf32>
      %45 = vector.shape_cast %42 : vector<1x1xf32> to vector<1x1x1xf32>
      tpu.vector_store %arg5[%c0_31, %c0_32, %c0_33], %45 {strides = array<i32>} : memref<1x1x1xf32, #tpu.memory_space<vmem>>, vector<1x1x1xf32>,
    } else {
    }
    %c0 = arith.constant 0 : index
    %c0_1 = arith.constant 0 : index
    %c0_2 = arith.constant 0 : index
    %c0_3 = arith.constant 0 : index
    %3 = vector.load %arg3[%c0, %c0_1, %c0_2, %c0_3] : memref<1x3x2x128xf32, #tpu.memory_space<vmem>>, vector<1x1x2x128xf32>
    %4 = vector.shape_cast %3 : vector<1x1x2x128xf32> to vector<2x128xf32>
    %c0_4 = arith.constant 0 : index
    %5 = memref.load %arg2[%c0_4] : memref<1xf32, #tpu.memory_space<smem>>
    %6 = vector.broadcast %5 : f32 to vector<2x128xf32>
    %7 = arith.cmpf ole, %4, %6 : vector<2x128xf32>
    %c0_5 = arith.constant 0 : index
    %c0_6 = arith.constant 0 : index
    %c0_7 = arith.constant 0 : index
    %8 = vector.load %arg4[%c0_5, %c0_6, %c0_7] : memref<1x1x1xf32, #tpu.memory_space<vmem>>, vector<1x1x1xf32>
    %9 = vector.shape_cast %8 : vector<1x1x1xf32> to vector<1x1xf32>
    %c0_8 = arith.constant 0 : index
    %c1 = arith.constant 1 : index
    %c0_9 = arith.constant 0 : index
    %c0_10 = arith.constant 0 : index
    %10 = vector.load %arg3[%c0_8, %c1, %c0_9, %c0_10] : memref<1x3x2x128xf32, #tpu.memory_space<vmem>>, vector<1x1x2x128xf32>
    %11 = vector.shape_cast %10 : vector<1x1x2x128xf32> to vector<2x128xf32>
    %cst = arith.constant 0.000000e+00 : f32
    %12 = vector.broadcast %cst : f32 to vector<2x128xf32>
    %13 = arith.select %7, %11, %12 : vector<2x128xi1>, vector<2x128xf32>
    %14 = vector.shape_cast %13 : vector<2x128xf32> to vector<1x2x128xf32>
    %cst_11 = arith.constant dense<0.000000e+00> : vector<1xf32>
    %15 = vector.multi_reduction <add>, %14, %cst_11 [1, 2] : vector<1x2x128xf32> to vector<1xf32>
    %16 = vector.shape_cast %15 : vector<1xf32> to vector<1x1x1xf32>
    %17 = vector.extract %16[0, 0, 0] : f32 from vector<1x1x1xf32>
    %18 = vector.broadcast %17 : f32 to vector<1x1xf32>
    %19 = arith.addf %9, %18 : vector<1x1xf32>
    %c0_12 = arith.constant 0 : index
    %c0_13 = arith.constant 0 : index
    %c0_14 = arith.constant 0 : index
    %20 = vector.load %arg4[%c0_12, %c0_13, %c0_14] : memref<1x1x1xf32, #tpu.memory_space<vmem>>, vector<1x1x1xf32>
    %21 = vector.shape_cast %20 : vector<1x1x1xf32> to vector<1x1xf32>
    %22 = vector.shape_cast %19 : vector<1x1xf32> to vector<1x1x1xf32>
    tpu.vector_store %arg4[%c0_12, %c0_13, %c0_14], %22 {strides = array<i32>} : memref<1x1x1xf32, #tpu.memory_space<vmem>>, vector<1x1x1xf32>,
    %c0_15 = arith.constant 0 : index
    %c0_16 = arith.constant 0 : index
    %c0_17 = arith.constant 0 : index
    %23 = vector.load %arg5[%c0_15, %c0_16, %c0_17] : memref<1x1x1xf32, #tpu.memory_space<vmem>>, vector<1x1x1xf32>
    %24 = vector.shape_cast %23 : vector<1x1x1xf32> to vector<1x1xf32>
    %c0_18 = arith.constant 0 : index
    %c2 = arith.constant 2 : index
    %c0_19 = arith.constant 0 : index
    %c0_20 = arith.constant 0 : index
    %25 = vector.load %arg3[%c0_18, %c2, %c0_19, %c0_20] : memref<1x3x2x128xf32, #tpu.memory_space<vmem>>, vector<1x1x2x128xf32>
    %26 = vector.shape_cast %25 : vector<1x1x2x128xf32> to vector<2x128xf32>
    %cst_21 = arith.constant 0.000000e+00 : f32
    %27 = vector.broadcast %cst_21 : f32 to vector<2x128xf32>
    %28 = arith.select %7, %26, %27 : vector<2x128xi1>, vector<2x128xf32>
    %29 = vector.shape_cast %28 : vector<2x128xf32> to vector<1x2x128xf32>
    %cst_22 = arith.constant dense<0.000000e+00> : vector<1xf32>
    %30 = vector.multi_reduction <add>, %29, %cst_22 [1, 2] : vector<1x2x128xf32> to vector<1xf32>
    %31 = vector.shape_cast %30 : vector<1xf32> to vector<1x1x1xf32>
    %32 = vector.extract %31[0, 0, 0] : f32 from vector<1x1x1xf32>
    %33 = vector.broadcast %32 : f32 to vector<1x1xf32>
    %34 = arith.addf %24, %33 : vector<1x1xf32>
    %c0_23 = arith.constant 0 : index
    %c0_24 = arith.constant 0 : index
    %c0_25 = arith.constant 0 : index
    %35 = vector.load %arg5[%c0_23, %c0_24, %c0_25] : memref<1x1x1xf32, #tpu.memory_space<vmem>>, vector<1x1x1xf32>
    %36 = vector.shape_cast %35 : vector<1x1x1xf32> to vector<1x1xf32>
    %37 = vector.shape_cast %34 : vector<1x1xf32> to vector<1x1x1xf32>
    tpu.vector_store %arg5[%c0_23, %c0_24, %c0_25], %37 {strides = array<i32>} : memref<1x1x1xf32, #tpu.memory_space<vmem>>, vector<1x1x1xf32>,
    return
  }
  func.func @transform_0(%arg0: i32, %arg1: i32) -> i32 {
    %c0_i32 = arith.constant 0 : i32
    %c0_i32_0 = arith.constant 0 : i32
    return %c0_i32 : i32
  }
  func.func @transform_1(%arg0: i32, %arg1: i32) -> (i32, i32, i32, i32) {
    %c0_i32 = arith.constant 0 : i32
    %c0_i32_0 = arith.constant 0 : i32
    %c0_i32_1 = arith.constant 0 : i32
    return %arg0, %c0_i32, %arg1, %c0_i32_0 : i32, i32, i32, i32
  }
  func.func @transform_2(%arg0: i32, %arg1: i32) -> (i32, i32, i32) {
    %c0_i32 = arith.constant 0 : i32
    %c0_i32_0 = arith.constant 0 : i32
    %c0_i32_1 = arith.constant 0 : i32
    return %arg0, %c0_i32, %c0_i32_0 : i32, i32, i32
  }
  func.func @transform_3(%arg0: i32, %arg1: i32) -> (i32, i32, i32) {
    %c0_i32 = arith.constant 0 : i32
    %c0_i32_0 = arith.constant 0 : i32
    %c0_i32_1 = arith.constant 0 : i32
    return %arg0, %c0_i32, %c0_i32_0 : i32, i32, i32
  }
}

</mosaic_0001>

<bundles_post_ra>
// kernel: neg.1
= control target key start
LH: loop header
LB: loop body
LE: loop exit
PB: predicated region body
PF: predicated region fallthrough
CT: control target
= control target key end

     0   :  { %s24_s0 = inlined_call_operand.vmem [shape: f32[512], index: 0, kind: input, shape index: {}]   ;;  %s25_s1 = inlined_call_operand.vmem [shape: f32[512], index: 1, kind: output, shape index: {}]  }
   0x1   :  { %v2_v0 = vld [vmem:[%s24_s0] sm:$0xf] }
   0x2   :  { %v5_v1 = vxor.u32 2147483648, %v2_v0 }
   0x4   :  { %7 = vst [vmem:[%s25_s1] sm:$0xf] %v5_v1 }

// kernel: ohem_cross_entropy_loss.2
= control target key start
LH: loop header
LB: loop body
LE: loop exit
PB: predicated region body
PF: predicated region fallthrough
CT: control target
= control target key end

     0   :  { %s463_s9 = smov 0   ;;  %s465_s10 = smov 0   ;;  %s538_s0 = inlined_call_operand.vmem [shape: f32[2,5,2,128], index: 0, kind: input, shape index: {}]   ;;  %s539_s1 = inlined_call_operand.vmem [shape: s32[2,2,128], index: 1, kind: input, shape index: {}]   ;;  %s540_s2 = inlined_call_operand.vmem [shape: f32[2,3,2,128], index: 2, kind: output, shape index: {}]  }
   0x1   :  { %s467_s11 = smov 0  }
   0x2 LB: > { %s24_s12 = sadd.s32 1, %s441_s10  ;;  %p370_p0 = scmp.ge.s32.totalorder %s445_s11, 1  ;;  %s445_s11 = sphi %s467_s11, %s12_s11   ;;  %s441_s10 = sphi %s465_s10, %s542_s10   ;;  %s437_s9 = sphi %s463_s9, %s541_s9  }
   0x3   : > { %p26_p1 = scmp.ge.s32.totalorder %s24_s12, 2  ;;  %p145_p2 = scmp.lt.s32.totalorder %s445_s11, 3 }
   0x5   : > { %s544_s12 = smov (%p26_p1, %s24_s12), 0  ;;  %p146_p3 = pnand %p370_p0, %p145_p2 }
   0x6   : > { %p180_p4 = scmp.lt.s32.totalorder (!%p146_p3), %s437_s9, 1 }
   0x7   : > { %149 = sbr.rel (%p146_p3) target bundleno = 77 (0x4d), region = 28 }
   0xc   : > { %s546_s9 = smov (!%p180_p4, %s437_s9), 1  ;;  %v447_v6 = vmov 0.0  }
   0xd   : > { %s382_s13 = smul.u32 10, %s546_s9  ;;  %s372_s14 = sshll.u32 %s546_s9, 1 }
   0xe   : > { %s194_s17 = scalar_lea.vmem %s539_s1, %s372_s14  ;;  %s383_s21 = smul.u32 6, %s546_s9 }
   0xf   : > { %s187_s20 = scalar_lea.vmem %s538_s0, %s382_s13  ;;  %v487_v0 = vld [vmem:[%s194_s17] sm:$0x3] }
  0x10   : > { %v204_v1 = vld [vmem:[%s187_s20] sm:$0x3]  ;;  %v374_v2 = vld [vmem:[%s187_s20 + $0x2] sm:$0x3]  ;;  %v375_v3 = vld [vmem:[%s187_s20 + $0x4] sm:$0x3]  ;;  %s503_s24 = scalar_lea.vmem %s540_s2, %s383_s21 }
  0x11   : > { %v213_v4 = vmax.f32 %v204_v1, %v374_v2  ;;  %vm221_vm0 = vcmp.eq.s32.totalorder %v487_v0, 0  ;;  %v376_v5 = vld [vmem:[%s187_s20 + $0x6] sm:$0x3]  ;;  %vm228_vm1 = vcmp.eq.s32.totalorder %v487_v0, 1  ;;  %vm235_vm2 = vcmp.eq.s32.totalorder %v487_v0, 2 }
  0x12   : > { %v223_v7 = vsel %vm221_vm0, 1.4543, %v447_v6  ;;  %v377_v10 = vld [vmem:[%s187_s20 + $0x8] sm:$0x3]  ;;  %vm257_vm3 = vcmp.ne.s32.totalorder %v487_v0, 4294967295  ;;  %vm242_vm4 = vcmp.eq.s32.totalorder %v487_v0, 3 }
  0x13   : > { %v214_v8 = vmax.f32 %v213_v4, %v375_v3  ;;  %v230_v9 = vsel %vm228_vm1, 43.8739, %v223_v7  ;;  %vm249_vm5 = vcmp.eq.s32.totalorder %v487_v0, 4  ;;  %v222_v36 = vsel %vm221_vm0, %v204_v1, 0.0 }
  0x14   : > { %v237_v11 = vsel %vm235_vm2, 34.241, %v230_v9  ;;  %v229_v37 = vsel %vm228_vm1, %v374_v2, %v222_v36 }
  0x15   : > { %v215_v12 = vmax.f32 %v214_v8, %v376_v5  ;;  %v244_v13 = vsel %vm242_vm4, 47.3663, %v237_v11  ;;  %v236_v38 = vsel %vm235_vm2, %v375_v3, %v229_v37 }
  0x16   : > { %v251_v14 = vsel %vm249_vm5, 27.4869, %v244_v13  ;;  %v243_v40 = vsel %vm242_vm4, %v376_v5, %v236_v38 }
  0x17   : > { %v216_v15 = vmax.f32 %v215_v12, %v377_v10  ;;  %v265_v16 = vsel %vm257_vm3, %v251_v14, 0.0  ;;  %v250_v44 = vsel %vm249_vm5, %v377_v10, %v243_v40 }
  0x18   : > { %379 = vst [vmem:[%s503_s24 + $0x4] sm:$0x3] %v265_v16 }
  0x19   : > { %v217_v17 = vsub.f32 %v204_v1, %v216_v15  ;;  %v224_v18 = vsub.f32 %v374_v2, %v216_v15  ;;  %v231_v19 = vsub.f32 %v375_v3, %v216_v15  ;;  %v238_v20 = vsub.f32 %v376_v5, %v216_v15 }
  0x1a   : > { %v245_v21 = vsub.f32 %v377_v10, %v216_v15 }
  0x1b   : > { %v218_v22 = vmul.f32 1.442695, %v217_v17  ;;  %v225_v23 = vmul.f32 1.442695, %v224_v18  ;;  %v232_v24 = vmul.f32 1.442695, %v231_v19 }
  0x1c   : > { %v239_v25 = vmul.f32 1.442695, %v238_v20  ;;  %v246_v26 = vmul.f32 1.442695, %v245_v21 }
  0x1d   : > { %409 = vpow2.f32 %v218_v22 }
  0x1e   : > { %411 = vpow2.f32 %v225_v23 }
  0x1f   : > { %413 = vpow2.f32 %v232_v24 }
  0x20   : > { %415 = vpow2.f32 %v239_v25 }
  0x21   : > { %417 = vpow2.f32 %v246_v26 }
  0x2a   : > { %v410_v27 = vpop.eup %409 }
  0x2b   : > { %v412_v28 = vpop.eup %411 }
  0x2c   : > { %v414_v29 = vpop.eup %413  ;;  %v227_v30 = vadd.f32 %v412_v28, %v410_v27 }
  0x2d   : > { %v416_v31 = vpop.eup %415 }
  0x2e   : > { %v234_v32 = vadd.f32 %v414_v29, %v227_v30  ;;  %v418_v33 = vpop.eup %417 }
  0x30   : > { %v241_v34 = vadd.f32 %v416_v31, %v234_v32 }
  0x32   : > { %v248_v35 = vadd.f32 %v418_v33, %v241_v34 }
  0x34   : > { %419 = vrcp.f32 %v248_v35 }
  0x35   : > { %421 = vlog2.f32 %v248_v35 }
  0x41   : > { %v420_v39 = vpop.eup %419 }
  0x42   : > { %v422_v41 = vpop.eup %421  ;;  %v258_v42 = vsel %vm257_vm3, %v420_v39, 2.0 }
  0x43   : > { %259 = vst [vmem:[%s503_s24] sm:$0x3] %v258_v42  ;;  %v253_v43 = vmul.f32 0.6931472, %v422_v41 }
  0x45   : > { %v254_v45 = vadd.f32 %v253_v43, %v216_v15 }
  0x47   : > { %v260_v46 = vsub.f32 %v254_v45, %v250_v44 }
  0x49   : > { %v261_v47 = vmul.f32 %v260_v46, %v251_v14 }
  0x4b   : > { %v262_v48 = vsel %vm257_vm3, %v261_v47, 0.0 }
  0x4c   : > { %378 = vst [vmem:[%s503_s24 + $0x2] sm:$0x3] %v262_v48 }
  0x4d PF: > { %s12_s11 = sadd.s32 1, %s445_s11   ;;  %s541_s9 = smov %s441_s10 }
  0x4e   : > { %p9_p5 = scmp.ge.s32.totalorder %s12_s11, 4   ;;  %s542_s10 = smov %s544_s12 }
  0x50   :  { %11 = sbr.rel (!%p9_p5) target bundleno = 2 (0x2), region = 67 }

// kernel: ohem_cross_entropy_loss.3
= control target key start
LH: loop header
LB: loop body
LE: loop exit
PB: predicated region body
PF: predicated region fallthrough
CT: control target
= control target key end

     0   :  { %s421_s14 = smov 0   ;;  %s423_s15 = smov 0   ;;  %s461_s0 = inlined_call_operand.<no memory space> [shape: f32[1], index: 0, kind: input, shape index: {}]   ;;  %s462_s1 = inlined_call_operand.vmem [shape: f32[2,3,2,128], index: 1, kind: input, shape index: {}]   ;;  %s463_s2 = inlined_call_operand.vmem [shape: f32[2,1,1], index: 2, kind: output, shape index: {0}]   ;;  %s464_s3 = inlined_call_operand.vmem [shape: f32[2,1,1], index: 3, kind: output, shape index: {1}]  }
   0x1   :  { %9 = sst [smem:[#allocation2]] %s461_s0  ;;  %s425_s16 = smov 0  }
   0x2 LB: > { %s27_s0 = sadd.s32 1, %s391_s15  ;;  %p337_p0 = scmp.ge.s32.totalorder %s395_s16, 1  ;;  %s395_s16 = sphi %s425_s16, %s15_s16   ;;  %s391_s15 = sphi %s423_s15, %s466_s15   ;;  %s387_s14 = sphi %s421_s14, %s465_s14  }
   0x3   : > { %p29_p1 = scmp.ge.s32.totalorder %s27_s0, 2  ;;  %p158_p2 = scmp.lt.s32.totalorder %s395_s16, 3 }
   0x5   : > { %s468_s0 = smov (%p29_p1, %s27_s0), 0  ;;  %p159_p3 = pnand %p337_p0, %p158_p2 }
   0x6   : > { %p186_p4 = scmp.lt.s32.totalorder (!%p159_p3), %s387_s14, 1  ;;  %s208_s17 = sld [smem:[#allocation2]] (!%p159_p3) }
   0x7   : > { %162 = sbr.rel (%p159_p3) target bundleno = 228 (0xe4), region = 28 }
   0xc   : > { %s470_s14 = smov (!%p186_p4, %s387_s14), 1  ;;  %v209_v0 = vstv %s208_s17  ;;  %vm215_vm0 = vcmask 1041408   ;;  %vm204_vm2 = vcmask 0   ;;  %v397_v8 = vmov 0.0  }
   0xd   : > { %s343_s18 = smul.u32 6, %s470_s14  ;;  %s196_s24 = scalar_lea.vmem %s463_s2, %s470_s14 }
   0xe   : > { %205 = vst.msk [vmem:[%s196_s24] sm:$0x1] %vm204_vm2, %v397_v8  ;;  %s199_s27 = scalar_lea.vmem %s464_s3, %s470_s14 }
   0xf   : > { %s193_s21 = scalar_lea.vmem %s462_s1, %s343_s18  ;;  %206 = vst.msk [vmem:[%s199_s27] sm:$0x1] %vm204_vm2, %v397_v8 }
  0x10   : > { %v207_v1 = vld [vmem:[%s193_s21] sm:$0x3]  ;;  %v339_v2 = vld [vmem:[%s193_s21 + $0x2] sm:$0x3]  ;;  %v340_v3 = vld [vmem:[%s193_s21 + $0x4] sm:$0x3] }
  0x11   : > { %vm210_vm1 = vcmp.le.f32.partialorder %v207_v1, %v209_v0 }
  0x12   : > { %v214_v4 = vsel %vm210_vm1, %v339_v2, 0.0  ;;  %v233_v5 = vsel %vm210_vm1, %v340_v3, 0.0 }
  0x13   : > { %v216_v6 = vsel %vm215_vm0, %v214_v4, 0.0  ;;  %v234_v7 = vsel %vm215_vm0, %v233_v5, 0.0 }
  0x14   : > { %217 = vadd.xlane.f32.xlu0 %v216_v6 }
  0x15   : > { %v211_v23 = vld [vmem:[%s196_s24] sm:$0x1] }
  0x16   : > { %v230_v26 = vld [vmem:[%s199_s27] sm:$0x1] }
  0x18   : > { %235 = vadd.xlane.f32.xlu0 %v234_v7 }
  0x9d   : > { %v218_v9 = vpop.xlane.xlu0 %217 }
  0x9e   : > { %v219_v10 = vrot.slane %v218_v9, 4 }
  0xa0   : > { %v220_v11 = vadd.f32 %v219_v10, %v218_v9 }
  0xa1   : > { %v236_v12 = vpop.xlane.xlu0 %235 }
  0xa2   : > { %v221_v13 = vrot.slane %v220_v11, 2  ;;  %v237_v14 = vrot.slane %v236_v12, 4 }
  0xa4   : > { %v238_v15 = vadd.f32 %v237_v14, %v236_v12  ;;  %v222_v16 = vadd.f32 %v221_v13, %v220_v11 }
  0xa6   : > { %v239_v17 = vrot.slane %v238_v15, 2  ;;  %v223_v18 = vrot.slane %v222_v16, 1 }
  0xa8   : > { %v240_v19 = vadd.f32 %v239_v17, %v238_v15  ;;  %v224_v20 = vadd.f32 %v223_v18, %v222_v16 }
  0xaa   : > { %344 = vpush %v224_v20  ;;  %v241_v21 = vrot.slane %v240_v19, 1 }
  0xac   : > { %v242_v22 = vadd.f32 %v241_v21, %v240_v19 }
  0xae   : > { %346 = vpush %v242_v22 }
  0xdb   : > { %s345_s28 = spop %344 }
  0xdc   : > { %v226_v24 = vstv %s345_s28 }
  0xdd   : > { %v227_v25 = vadd.f32 %v226_v24, %v211_v23 }
  0xdf   : > { %229 = vst.msk [vmem:[%s196_s24] sm:$0x1] %vm204_vm2, %v227_v25  ;;  %s347_s29 = spop %346 }
  0xe0   : > { %v244_v27 = vstv %s347_s29 }
  0xe1   : > { %v245_v28 = vadd.f32 %v244_v27, %v230_v26 }
  0xe3   : > { %246 = vst.msk [vmem:[%s199_s27] sm:$0x1] %vm204_vm2, %v245_v28 }
  0xe4 PF: > { %s15_s16 = sadd.s32 1, %s395_s16   ;;  %s465_s14 = smov %s391_s15 }
  0xe5   : > { %p12_p5 = scmp.ge.s32.totalorder %s15_s16, 4   ;;  %s466_s15 = smov %s468_s0 }
  0xe7   :  { %14 = sbr.rel (!%p12_p5) target bundleno = 2 (0x2), region = 76 }

</bundles_post_ra>
